<compile_context>
chip_gen: v6e
topology: v6e:2x2x1
jax: 0.10.0
libtpu: 0.0.40
codegen_flags: <defaults>
</compile_context>

<pallas_src>
import functools

import jax
import jax.numpy as jnp
from jax.experimental import pallas as pl
from jax.experimental.pallas import tpu as pltpu


def generate_filter(start, end, size):
    return [[0.0 if (i + j > end or i + j < start) else 1.0
             for j in range(size)] for i in range(size)]


def _cdiv(a, b):
    return -(-a // b)


def _filter_kernel(filt_ref, x_ref, o_ref):
    # filt_ref: VMEM (1, tc)  — pre-folded (base + norm_sigma(learnable)) [/ ft_num]
    # x_ref / o_ref: VMEM (tb, tc) — flattened (n, c) planes x (h*w) lanes
    o_ref[...] = x_ref[...] * filt_ref[...]


def _choose_blocks(rows, cols, itemsize,
                   target_block_bytes=4 << 20,     # ~4 MiB blocks (85%+ roofline)
                   max_row_bytes=64 << 10):        # cap bytes per block row
    """Pick (tb, tc) obeying the (8,128) tiling rule, ~target bytes/block."""
    # Lane (cols) block: full width unless cols is a large multiple of 128.
    if cols % 128 == 0 and cols * itemsize > max_row_bytes:
        tc = max(128, (max_row_bytes // itemsize // 128) * 128)
        tc = min(tc, cols)
    else:
        tc = cols
    col_steps = _cdiv(cols, tc)

    # Sublane (rows) block: dtype-aware budget, multiple of 8 (or full rows),
    # with an even total step count when cheap (v7x has 2 TensorCores).
    row_budget = max(1, target_block_bytes // (tc * itemsize))
    if rows <= row_budget:
        tb = rows
    else:
        tb0 = max(8, (row_budget // 8) * 8)
        steps = _cdiv(rows, tb0)
        if steps > 1 and (steps * col_steps) % 2 == 1:
            steps += 1                              # balance across 2 TCs (v7x)
        tb = min(rows, max(8, _cdiv(_cdiv(rows, steps) + 7, 8) * 8 if False else
                           ((_cdiv(rows, steps) + 7) // 8) * 8))
    return tb, tc


@functools.partial(jax.jit,
                   static_argnames=("use_learnable", "norm", "force_pallas"))
def filter_forward(x, base, learnable, ft_num, *,
                   use_learnable=True, norm=False, force_pallas=False):
    """x: [N, C, H, W]; base/learnable: [H, W]; ft_num: scalar."""
    N, C, H, W = x.shape
    itemsize = x.dtype.itemsize
    rows, cols = N * C, H * W

    # --- Hoist the (parameter-sized) filter computation out of the grid loop ---
    if use_learnable:
        filt2d = base + (2.0 * jax.nn.sigmoid(learnable) - 1.0)
    else:
        filt2d = base
    filt2d = filt2d.astype(jnp.float32)
    if norm:
        # Folded: x * (filt/ft_num) == (x*filt)/ft_num up to rounding.
        # Note: ft_num == 0 (empty band) would yield inf/nan, as in the module.
        filt2d = filt2d / ft_num
    filt2d = filt2d.astype(x.dtype)

    # --- Lane-packing for tiny filters (H*W < 128): k planes per row ---
    k = 1
    if cols < 128:
        k = max(1, 128 // cols)
        while k > 1 and rows % k != 0:
            k -= 1
    prows, pcols = rows // k, cols * k

    tb, tc = _choose_blocks(prows, pcols, itemsize)

    # Double-buffered in + out blocks + resident filter row.
    est_vmem = 4 * tb * tc * itemsize + 2 * tc * itemsize
    total_bytes = x.size * itemsize
    use_pallas = force_pallas or total_bytes >= (1 << 20)
    if est_vmem > (28 << 20):
        use_pallas = False          # degenerate tiling would blow scoped VMEM

    if not use_pallas:
        # Tiny / degenerate problems: launch + pipeline overhead dominates;
        # let XLA fuse the broadcasted multiply.
        return x * filt2d[None, None, :, :]

    x_flat = x.reshape(prows, pcols)
    filt_row = filt2d.reshape(1, cols)
    if k > 1:
        filt_row = jnp.tile(filt_row, (1, k))

    grid = (_cdiv(prows, tb), _cdiv(pcols, tc))

    out_flat = pl.pallas_call(
        _filter_kernel,
        out_shape=jax.ShapeDtypeStruct((prows, pcols), x.dtype),
        grid=grid,
        in_specs=[
            pl.BlockSpec((1, tc), lambda i, j: (0, j)),    # filt (col-block resident)
            pl.BlockSpec((tb, tc), lambda i, j: (i, j)),   # x tiles
        ],
        out_specs=pl.BlockSpec((tb, tc), lambda i, j: (i, j)),
        compiler_params=pltpu.CompilerParams(
            dimension_semantics=("parallel", "parallel"),
            vmem_limit_bytes=32 * 1024 * 1024),
    )(filt_row, x_flat)

    return out_flat.reshape(N, C, H, W)


def _reference(x, base, learnable, ft_num, use_learnable, norm):
    filt = base + (2.0 * jax.nn.sigmoid(learnable) - 1.0) if use_learnable else base
    y = x * filt
    if norm:
        y = y / ft_num
    return y


if __name__ == "__main__":
    key = jax.random.PRNGKey(0)

    # --- Case 1: Filter(size=16, band 0..8), use_learnable=True, norm=True ---
    size, band_start, band_end = 16, 0, 8
    kx1, kl1, kx2, kl2 = jax.random.split(key, 4)

    base = jnp.asarray(generate_filter(band_start, band_end, size), dtype=jnp.float32)
    learnable = 0.1 * jax.random.normal(kl1, (size, size), dtype=jnp.float32)
    ft_num = jnp.sum(base)
    x = jax.random.normal(kx1, (2, 4, size, size), dtype=jnp.float32)

    y = filter_forward(x, base, learnable, ft_num,
                       use_learnable=True, norm=True, force_pallas=True)
    y = jax.block_until_ready(y)
    y_ref = _reference(x, base, learnable, ft_num, True, True)
    assert jnp.allclose(y, y_ref, atol=1e-5, rtol=1e-5), "case1 mismatch vs reference"

    # --- Case 2: small filter (H*W < 128) exercises the lane-packing path ---
    size2 = 8
    base2 = jnp.asarray(generate_filter(0, 4, size2), dtype=jnp.float32)
    learnable2 = 0.1 * jax.random.normal(kl2, (size2, size2), dtype=jnp.float32)
    ft_num2 = jnp.sum(base2)
    x2 = jax.random.normal(kx2, (2, 4, size2, size2), dtype=jnp.float32)

    y2 = filter_forward(x2, base2, learnable2, ft_num2,
                        use_learnable=True, norm=False, force_pallas=True)
    y2 = jax.block_until_ready(y2)
    y2_ref = _reference(x2, base2, learnable2, ft_num2, True, False)
    assert jnp.allclose(y2, y2_ref, atol=1e-5, rtol=1e-5), "case2 mismatch vs reference"

    print("KERNEL_OK")
</pallas_src>

<mosaic_0001>
module attributes {stable_mosaic.version = 11 : i64} {
  func.func @_filter_kernel(%arg0: i32, %arg1: i32, %arg2: memref<1x256xf32, #tpu.memory_space<vmem>>, %arg3: memref<8x256xf32, #tpu.memory_space<vmem>>, %arg4: memref<8x256xf32, #tpu.memory_space<vmem>>) attributes {dimension_semantics = [#tpu.dimension_semantics<parallel>, #tpu.dimension_semantics<parallel>], iteration_bounds = array<i64: 1, 1>, scalar_prefetch = 0 : i64, scratch_operands = 0 : i64, tpu.core_type = #tpu.core_type<tc>, window_params = [{transform_indices = @transform_0, window_bounds = array<i64: 1, 256>}, {transform_indices = @transform_1, window_bounds = array<i64: 8, 256>}, {transform_indices = @transform_2, window_bounds = array<i64: 8, 256>}]} {
    %c0 = arith.constant 0 : index
    %c0_0 = arith.constant 0 : index
    %0 = vector.load %arg3[%c0, %c0_0] : memref<8x256xf32, #tpu.memory_space<vmem>>, vector<8x256xf32>
    %c0_1 = arith.constant 0 : index
    %c0_2 = arith.constant 0 : index
    %1 = vector.load %arg2[%c0_1, %c0_2] : memref<1x256xf32, #tpu.memory_space<vmem>>, vector<1x256xf32>
    %2 = vector.broadcast %1 : vector<1x256xf32> to vector<8x256xf32>
    %3 = arith.mulf %0, %2 : vector<8x256xf32>
    %c0_3 = arith.constant 0 : index
    %c0_4 = arith.constant 0 : index
    %4 = vector.load %arg4[%c0_3, %c0_4] : memref<8x256xf32, #tpu.memory_space<vmem>>, vector<8x256xf32>
    tpu.vector_store %arg4[%c0_3, %c0_4], %3 {strides = array<i32>} : memref<8x256xf32, #tpu.memory_space<vmem>>, vector<8x256xf32>,
    return
  }
  func.func @transform_0(%arg0: i32, %arg1: i32) -> (i32, i32) {
    %c0_i32 = arith.constant 0 : i32
    %c0_i32_0 = arith.constant 0 : i32
    return %c0_i32, %arg1 : i32, i32
  }
  func.func @transform_1(%arg0: i32, %arg1: i32) -> (i32, i32) {
    %c0_i32 = arith.constant 0 : i32
    return %arg0, %arg1 : i32, i32
  }
  func.func @transform_2(%arg0: i32, %arg1: i32) -> (i32, i32) {
    %c0_i32 = arith.constant 0 : i32
    return %arg0, %arg1 : i32, i32
  }
}

</mosaic_0001>

<bundles_post_ra>
// kernel: filter_forward.1
= control target key start
LH: loop header
LB: loop body
LE: loop exit
PB: predicated region body
PF: predicated region fallthrough
CT: control target
= control target key end

     0   :  { %v15_v0 = vlaneseq  ;;  %s63_s0 = inlined_call_operand.vmem [shape: f32[1,256], index: 0, kind: input, shape index: {}]   ;;  %s64_s1 = inlined_call_operand.vmem [shape: f32[8,256], index: 1, kind: input, shape index: {}]   ;;  %s65_s2 = inlined_call_operand.vmem [shape: f32[8,256], index: 2, kind: output, shape index: {}]  }
   0x1   :  { %v13_v2 = vld [vmem:[%s63_s0] sm:$0x3]  ;;  %v12_v6 = vld [vmem:[%s64_s1 + $0x8] sm:$0xff] }
   0x2   :  { %v16_v1 = vshrl.u32 %v15_v0, 7  ;;  %v11_v5 = vld [vmem:[%s64_s1] sm:$0xff] }
   0x4   :  { %v17_v3 = vsub.s32 0, %v16_v1  ;;  %v21_v4 = vsub.s32 1, %v16_v1 }
   0x6   :  { %v18_v7 = vrot.slane %v13_v2, %v17_v3  ;;  %v22_v8 = vrot.slane %v13_v2, %v21_v4 }
   0x8   :  { %v25_v9 = vmul.f32 %v18_v7, %v11_v5  ;;  %v26_v10 = vmul.f32 %v22_v8, %v12_v6 }
   0xa   :  { %27 = vst [vmem:[%s65_s2] sm:$0xff] %v25_v9  ;;  %28 = vst [vmem:[%s65_s2 + $0x8] sm:$0xff] %v26_v10 }

</bundles_post_ra>
